<compile_context>
chip_gen: v7x
topology: tpu7x:2x2x1
jax: 0.10.0
libtpu: 0.0.40
codegen_flags: <defaults>
</compile_context>

<pallas_src>
import functools
import math

import jax
import jax.numpy as jnp
from jax.experimental import pallas as pl
from jax.experimental.pallas import tpu as pltpu


def _arcface_kernel(logits_ref, labels_ref, out_ref, *, s, s_cos_m, s_sin_m, tc):
    # logits_ref: (tb, tc) f32 tile; labels_ref: (tb, 1) i32 tile.
    j = pl.program_id(1)                       # class-tile index (innermost)
    x = logits_ref[...]                        # (tb, tc) f32

    # (1, tc) iota of global class indices for this tile; compare broadcasts
    # against the (tb, 1) labels column — avoids a full (tb, tc) int32 iota.
    col = jax.lax.broadcasted_iota(jnp.int32, (1, tc), 1) + j * tc
    lbl = labels_ref[...]                      # (tb, 1) int32
    is_target = col == lbl                     # (tb, tc) bool via broadcast

    # cos(arccos(x) + m) * s = x*(s*cos m) - sqrt(1 - x^2)*(s*sin m);
    # clamp before sqrt for numerical safety (also keeps padded lanes finite).
    sin_theta = jnp.sqrt(jnp.maximum(1.0 - x * x, 0.0))
    target_scaled = x * s_cos_m - sin_theta * s_sin_m
    nontarget_scaled = x * s

    out = jnp.where(is_target, target_scaled, nontarget_scaled)
    out_ref[...] = out.astype(out_ref.dtype)


def _pick_tile(dim, pref, align):
    """Largest tile <= pref that satisfies the (8,128) block constraint."""
    if dim <= pref:
        return dim                 # full extent is always legal
    return max(align, (pref // align) * align)


def arcface_forward(logits, labels, *, s=64.0, margin=0.5, tb=None, tc=None):
    """ArcFace margin application.

    logits: (B, C) float32 cosine similarities in [-1, 1]
    labels: (B,)   int32 target class per row
    returns (B, C) float32 margin-adjusted, scaled logits.
    """
    B, C = logits.shape

    # Mem-bound-friendly defaults.  tc is the lane/contiguous axis, so growing
    # it lengthens each contiguous DMA row; (256, 4096) f32 is 4 MiB per tile,
    # ~16 MiB live double-buffered (in + aliased out) — inside the explicit
    # 48 MiB limit below and inside v7x's 64 MiB physical VMEM.
    if tb is None:
        tb = _pick_tile(B, 256, 8)
    if tc is None:
        tc = _pick_tile(C, 4096, 128)

    labels2d = labels.astype(jnp.int32).reshape(B, 1)

    kernel = functools.partial(
        _arcface_kernel,
        s=float(s),
        s_cos_m=float(s * math.cos(margin)),
        s_sin_m=float(s * math.sin(margin)),
        tc=tc,
    )

    # Advisory cost for XLA scheduling around the custom call.
    cost = pl.CostEstimate(
        flops=6 * B * C,
        transcendentals=B * C,             # one sqrt per element
        bytes_accessed=8 * B * C + 4 * B,  # logits in + out, labels in
    )

    return pl.pallas_call(
        kernel,
        out_shape=jax.ShapeDtypeStruct((B, C), logits.dtype),
        grid_spec=pltpu.PrefetchScalarGridSpec(
            num_scalar_prefetch=0,
            # Ragged-safe grid; class axis innermost so the labels tile
            # (index_map constant in j) stays resident across class tiles.
            grid=(pl.cdiv(B, tb), pl.cdiv(C, tc)),
            in_specs=[
                pl.BlockSpec((tb, tc), lambda i, j: (i, j)),   # logits tile
                pl.BlockSpec((tb, 1), lambda i, j: (i, 0)),    # labels column
            ],
            out_specs=pl.BlockSpec((tb, tc), lambda i, j: (i, j)),
        ),
        compiler_params=pltpu.CompilerParams(
            dimension_semantics=("parallel", "parallel"),
            vmem_limit_bytes=48 << 20,
        ),
        # Match the torch in-place semantics: write back into the logits
        # buffer instead of allocating a second B x C array in HBM.
        input_output_aliases={0: 0},
        cost_estimate=cost,
    )(logits, labels2d)


def _reference(logits, labels, s=64.0, margin=0.5):
    # Direct transcription of the torch forward (arccos / +m at target / cos).
    theta = jnp.arccos(logits)
    onehot = jax.nn.one_hot(labels, logits.shape[1], dtype=logits.dtype)
    theta = theta + margin * onehot
    return jnp.cos(theta) * s


if __name__ == "__main__":
    B, C = 8, 256  # small test shapes: 8 rows, 256 classes
    key = jax.random.PRNGKey(0)
    k1, k2 = jax.random.split(key)
    # Cosine-similarity-like logits strictly inside (-1, 1).
    logits = jax.random.uniform(k1, (B, C), dtype=jnp.float32,
                                minval=-0.99, maxval=0.99)
    labels = jax.random.randint(k2, (B,), 0, C, dtype=jnp.int32)

    # Compute the reference before the kernel call (the kernel aliases its
    # output onto the logits input).
    ref = _reference(logits, labels, s=64.0, margin=0.5)

    out = arcface_forward(logits, labels, s=64.0, margin=0.5)
    out = jax.block_until_ready(out)

    assert out.shape == (B, C)
    assert jnp.allclose(out, ref, atol=1e-3, rtol=1e-3), "mismatch vs reference"

    print("KERNEL_OK")
</pallas_src>

<mosaic_0001>
module attributes {stable_mosaic.version = 11 : i64} {
  func.func @_arcface_kernel(%arg0: i32, %arg1: i32, %arg2: memref<8x256xf32, #tpu.memory_space<vmem>>, %arg3: memref<8x1xi32, #tpu.memory_space<vmem>>, %arg4: memref<8x256xf32, #tpu.memory_space<vmem>>) attributes {dimension_semantics = [#tpu.dimension_semantics<parallel>, #tpu.dimension_semantics<parallel>], iteration_bounds = array<i64: 1, 1>, scalar_prefetch = 0 : i64, scratch_operands = 0 : i64, tpu.core_type = #tpu.core_type<tc>, window_params = [{transform_indices = @transform_0, window_bounds = array<i64: 8, 256>}, {transform_indices = @transform_1, window_bounds = array<i64: 8, 1>}, {transform_indices = @transform_2, window_bounds = array<i64: 8, 256>}]} {
    %c0 = arith.constant 0 : index
    %c0_0 = arith.constant 0 : index
    %0 = vector.load %arg2[%c0, %c0_0] : memref<8x256xf32, #tpu.memory_space<vmem>>, vector<8x256xf32>
    %1 = tpu.iota {dimensions = array<i32: 1>} : vector<1x256xi32>
    %c256_i32 = arith.constant 256 : i32
    %2 = arith.muli %arg1, %c256_i32 : i32
    %3 = vector.broadcast %2 : i32 to vector<1x256xi32>
    %4 = arith.addi %1, %3 : vector<1x256xi32>
    %c0_1 = arith.constant 0 : index
    %c0_2 = arith.constant 0 : index
    %5 = vector.load %arg3[%c0_1, %c0_2] : memref<8x1xi32, #tpu.memory_space<vmem>>, vector<8x1xi32>
    %6 = vector.broadcast %4 : vector<1x256xi32> to vector<8x256xi32>
    %7 = vector.broadcast %5 : vector<8x1xi32> to vector<8x256xi32>
    %8 = arith.cmpi eq, %6, %7 : vector<8x256xi32>
    %9 = arith.mulf %0, %0 : vector<8x256xf32>
    %cst = arith.constant 1.000000e+00 : f32
    %10 = vector.broadcast %cst : f32 to vector<8x256xf32>
    %11 = arith.subf %10, %9 : vector<8x256xf32>
    %cst_3 = arith.constant 0.000000e+00 : f32
    %12 = vector.broadcast %cst_3 : f32 to vector<8x256xf32>
    %13 = arith.maximumf %11, %12 : vector<8x256xf32>
    %14 = math.sqrt %13 : vector<8x256xf32>
    %cst_4 = arith.constant 56.1652832 : f32
    %15 = vector.broadcast %cst_4 : f32 to vector<8x256xf32>
    %16 = arith.mulf %0, %15 : vector<8x256xf32>
    %cst_5 = arith.constant 30.6832352 : f32
    %17 = vector.broadcast %cst_5 : f32 to vector<8x256xf32>
    %18 = arith.mulf %14, %17 : vector<8x256xf32>
    %19 = arith.subf %16, %18 : vector<8x256xf32>
    %cst_6 = arith.constant 6.400000e+01 : f32
    %20 = vector.broadcast %cst_6 : f32 to vector<8x256xf32>
    %21 = arith.mulf %0, %20 : vector<8x256xf32>
    %22 = arith.select %8, %19, %21 : vector<8x256xi1>, vector<8x256xf32>
    %c0_7 = arith.constant 0 : index
    %c0_8 = arith.constant 0 : index
    %23 = vector.load %arg4[%c0_7, %c0_8] : memref<8x256xf32, #tpu.memory_space<vmem>>, vector<8x256xf32>
    tpu.vector_store %arg4[%c0_7, %c0_8], %22 {strides = array<i32>} : memref<8x256xf32, #tpu.memory_space<vmem>>, vector<8x256xf32>,
    return
  }
  func.func @transform_0(%arg0: i32, %arg1: i32) -> (i32, i32) {
    %c0_i32 = arith.constant 0 : i32
    return %arg0, %arg1 : i32, i32
  }
  func.func @transform_1(%arg0: i32, %arg1: i32) -> (i32, i32) {
    %c0_i32 = arith.constant 0 : i32
    %c0_i32_0 = arith.constant 0 : i32
    return %arg0, %c0_i32 : i32, i32
  }
  func.func @transform_2(%arg0: i32, %arg1: i32) -> (i32, i32) {
    %c0_i32 = arith.constant 0 : i32
    return %arg0, %arg1 : i32, i32
  }
}

</mosaic_0001>

<bundles_post_ra>
// kernel: tpu_custom_call.1
= control target key start
LH: loop header
LB: loop body
LE: loop exit
PB: predicated region body
PF: predicated region fallthrough
CT: control target
= control target key end

     0   :  { %7 = vsyncpa [#allocation3], 0  ;;  %s187_s0 = inlined_call_operand.hbm [shape: f32[8,256], index: 0, kind: input, shape index: {}, may-alias: {0,2}]   ;;  %s188_s1 = inlined_call_operand.vmem [shape: s32[8,1], index: 1, kind: input, shape index: {}]   ;;  %s189_s2 = inlined_call_operand.hbm [shape: f32[8,256], index: 2, kind: output, shape index: {}, may-alias: {0,2}]  }
   0x1   :  { %8 = vsyncpa [#allocation4], 0  ;;  %s142_s9 = smov [#allocation2]   ;;  %s94_s13 = scalar_lea.hbm %s187_s0, 256 }
   0x2   :  { %s15_s10 = sshll.u32 %s142_s9, 4  ;;  %p95_p0 = scmp.ne.s32.totalorder %s187_s0, %s94_s13  ;;  %s16_s10 = int_to_ptr.vmem [resolvable:$true] %s15_s10 }
   0x3   :  { %p98_p1 = scmp.lt.u32.totalorder %s94_s13, %s187_s0 }
   0x5   :  { %p100_p2 = pnand %p98_p1, %p95_p0 }
   0x7   :  { %103 = shalt.err (!%p100_p2)
}
   0x8   :  { %s104_s18 = scalar_lea.vmem %s16_s10, 256  ;;  %p109_p4 = scmp.lt.s32.totalorder %s16_s10, %s16_s10 }
   0x9   :  { %p105_p3 = scmp.ne.s32.totalorder %s16_s10, %s104_s18  ;;  %p110_p5 = scmp.lt.s32.totalorder %s104_s18, %s104_s18 }
   0xb   :  { %p111_p6 = por %p110_p5, %p109_p4 }
   0xd   :  { %p112_p7 = pnand %p111_p6, %p105_p3 }
   0xf   :  { %115 = shalt.err (!%p112_p7)
}
  0x10   :  { %18 = dma.hbm_to_vmem [thread:$0]  %s187_s0, 256, %s16_s10, [#allocation3]  }
  0x11   :  { %138 = dma.done.wait [#allocation3], 256  }
  0x12   :  { %139 = vsyncadd [#allocation3], 4294967040  ;;  %v143_v0 = vmov 0   ;;  %v33_v1 = vld [vmem:[%s188_s1] sm:$0xff]  ;;  %v25_v3 = vld [vmem:[#allocation2 + $0x8] sm:$0xff]  ;;  %v26_v18 = vlaneseq  ;;  %s144_s0 = smov [#allocation5]  }
  0x13   :  { %89 = vset.pattern.permute.xlu0 %v143_v0  ;;  %v24_v2 = vld [vmem:[#allocation2] sm:$0xff]  ;;  %v40_v5 = vmul.f32 %v25_v3, %v25_v3  ;;  %v60_v23 = vmul.f32 56.165283, %v25_v3  ;;  %v66_v30 = vmul.f32 64.0, %v25_v3  ;;  %s77_s1 = sshll.u32 %s144_s0, 4  ;;  %s78_s1 = int_to_ptr.vmem [resolvable:$true] %s77_s1 }
  0x14   :  { %35 = vperm.xlu0 %89, %v33_v1   ;;  %v39_v4 = vmul.f32 %v24_v2, %v24_v2  ;;  %v27_v21 = vand.u32 127, %v26_v18  ;;  %v59_v22 = vmul.f32 56.165283, %v24_v2  ;;  %v65_v29 = vmul.f32 64.0, %v24_v2  ;;  %s116_s23 = scalar_lea.vmem %s78_s1, 256  ;;  %p121_p9 = scmp.lt.s32.totalorder %s78_s1, %s78_s1 }
  0x15   :  { %v42_v7 = vsub.f32 1.0, %v40_v5  ;;  %p117_p8 = scmp.ne.s32.totalorder %s78_s1, %s116_s23  ;;  %p122_p10 = scmp.lt.s32.totalorder %s116_s23, %s116_s23 }
  0x16   :  { %v41_v6 = vsub.f32 1.0, %v39_v4  ;;  %v28_v26 = vadd.s32 128, %v27_v21 }
  0x17   :  { %v44_v9 = vmax.f32 %v42_v7, 0.0  ;;  %p123_p11 = por %p122_p10, %p121_p9 }
  0x18   :  { %v43_v8 = vmax.f32 %v41_v6, 0.0 }
  0x19   :  { %vm54_vm1 = vcmp.eq.f32.partialorder %v44_v9, inf  ;;  %v57_v15 = vand.u32 2147483648, %v44_v9  ;;  %vm56_vm3 = vcmp.eq.f32.partialorder %v44_v9, 0.0  ;;  %p124_p12 = pnand %p123_p11, %p117_p8 }
  0x1a   :  { %90 = vrsqrt.f32 %v43_v8  ;;  %vm47_vm0 = vcmp.eq.f32.partialorder %v43_v8, inf  ;;  %v50_v14 = vand.u32 2147483648, %v43_v8  ;;  %vm49_vm2 = vcmp.eq.f32.partialorder %v43_v8, 0.0 }
  0x1b   :  { %92 = vrsqrt.f32 %v44_v9 }
  0x24   :  { %v91_v10 = vpop.eup %90 }
  0x25   :  { %v93_v11 = vpop.eup %92  ;;  %v46_v12 = vmul.f32 %v91_v10, %v43_v8 }
  0x26   :  { %v53_v13 = vmul.f32 %v93_v11, %v44_v9 }
  0x27   :  { %v48_v16 = vsel %vm47_vm0, %v43_v8, %v46_v12 }
  0x28   :  { %v55_v17 = vsel %vm54_vm1, %v44_v9, %v53_v13  ;;  %v51_v19 = vsel %vm49_vm2, %v50_v14, %v48_v16 }
  0x29   :  { %v58_v20 = vsel %vm56_vm3, %v57_v15, %v55_v17  ;;  %v61_v24 = vmul.f32 30.683235, %v51_v19 }
  0x2a   :  { %v62_v25 = vmul.f32 30.683235, %v58_v20 }
  0x2b   :  { %v63_v27 = vsub.f32 %v59_v22, %v61_v24 }
  0x2c   :  { %v64_v28 = vsub.f32 %v60_v23, %v62_v25 }
  0x93   :  { %v36_v31 = vpop.permute.xlu0 %35 }
  0x94   :  { %vm37_vm4 = vcmp.eq.s32.totalorder %v27_v21, %v36_v31  ;;  %vm38_vm5 = vcmp.eq.s32.totalorder %v28_v26, %v36_v31 }
  0x95   :  { %v67_v32 = vsel %vm37_vm4, %v63_v27, %v65_v29  ;;  %v68_v33 = vsel %vm38_vm5, %v64_v28, %v66_v30 }
  0x96   :  { %69 = vst [vmem:[#allocation5] sm:$0xff] %v67_v32  ;;  %70 = vst [vmem:[#allocation5 + $0x8] sm:$0xff] %v68_v33 }
  0x97   :  { %127 = shalt.err (!%p124_p12)
}
  0x98   :  { %s128_s26 = scalar_lea.hbm %s189_s2, 256 }
  0x99   :  { %p129_p13 = scmp.ne.s32.totalorder %s189_s2, %s128_s26  ;;  %p132_p0 = scmp.lt.u32.totalorder %s128_s26, %s189_s2 }
  0x9b   :  { %p134_p1 = pnand %p132_p0, %p129_p13 }
  0x9d   :  { %137 = shalt.err (!%p134_p1)
}
  0x9e   :  { %80 = dma.vmem_to_hbm [thread:$0]  %s78_s1, 256, %s189_s2, [#allocation4]  }
  0x9f   :  { %140 = dma.done.wait [#allocation4], 256  }
  0xa0   :  { %141 = vsyncadd [#allocation4], 4294967040 }
  0xa1   :  { %84 = vsyncpa [#allocation3], 1 }
  0xa2   :  { %85 = vsyncpa [#allocation4], 1 }

</bundles_post_ra>
